<compile_context>
chip_gen: v7x
topology: tpu7x:2x2x1
jax: 0.10.0
libtpu: 0.0.40
codegen_flags: <defaults>
</compile_context>

<pallas_src>
import jax
import jax.numpy as jnp
from jax.experimental import pallas as pl
from jax.experimental.pallas import tpu as pltpu

WINDOW_SIZES = (3, 4, 5)


def _round_up(x, m):
    return (x + m - 1) // m * m


def mtcnn_forward(docs, params, *, batch_tile=None):
    emb = params['embedding']                                   # (V, E) f32
    w_convs = params['conv']                                    # [(s, E, F_i)]
    boe_w, boe_b = params['boe']                                # (E, E), (1, E)
    cls = params['cls']                                         # [((D, n_i), (1, n_i))]

    B, W0 = docs.shape
    E = emb.shape[1]
    filt = [w.shape[2] for w in w_convs]
    Fsum = sum(filt)
    smax = max(WINDOW_SIZES)
    n_cls = [w.shape[1] for (w, _) in cls]
    n_total = sum(n_cls)

    # ---- plain-JAX glue: mask, words-per-line, embedding gather -------------
    mask = (docs != 0)
    wpl = mask.sum(-1)
    max_words = jnp.maximum(wpl.max(), smax).astype(jnp.int32).reshape(1)
    x = emb[docs] * mask[..., None].astype(emb.dtype)           # (B, W0, E) f32
    # Guard all-padding rows (wpl == 0) so the BoE branch cannot emit inf/NaN.
    invw = (1.0 / jnp.maximum(wpl, 1).astype(jnp.float32))[:, None]

    # ---- pad words to a sublane multiple, batch to the batch tile ------------
    W = _round_up(max(W0, 8), 8)                 # also guarantees W >= smax
    if batch_tile is None:
        # Size the batch tile against a conservative activation budget so the
        # same choice stays legal on v7x (64 MiB physical / 32 MiB scoped).
        budget = 16 << 20
        per_row = (2 * W * E * 2                 # double-buffered bf16 x tile
                   + 3 * W * Fsum * 4            # f32 conv product / acc temps
                   + 4 * (Fsum + 2 * E + n_total))
        batch_tile = max(8, min(256, (budget // max(per_row, 1)) // 8 * 8))
    TB = max(8, min(batch_tile, _round_up(B, 8)))
    B_pad = _round_up(B, TB)

    x = jnp.pad(x, ((0, B_pad - B), (0, W - W0), (0, 0))).astype(jnp.bfloat16)
    invw = jnp.pad(invw, ((0, B_pad - B), (0, 0)), constant_values=1.0)

    # ---- fuse conv weights across window sizes -------------------------------
    # wcat[k][:, cols_of_window_s] == w_s[k] for k < s, zero otherwise.
    wcat = jnp.concatenate(
        [jnp.pad(w, ((0, smax - w.shape[0]), (0, 0), (0, 0))) for w in w_convs],
        axis=2).astype(jnp.bfloat16)                            # (smax, E, Fsum)
    boe_w_b = boe_w.astype(jnp.bfloat16)
    boe_b_f = boe_b.astype(jnp.float32)

    # ---- fuse the classifier heads -------------------------------------------
    cls_w = jnp.concatenate([w for (w, _) in cls], axis=1)      # (Fsum+E, n_total)
    cls_b = jnp.concatenate([b for (_, b) in cls], axis=1).astype(jnp.float32)
    clsw_conv = cls_w[:Fsum].astype(jnp.bfloat16)               # (Fsum, n_total)
    clsw_boe = cls_w[Fsum:].astype(jnp.bfloat16)                # (E, n_total)

    # column group boundaries -> window size per output column
    f_bounds = []
    acc = 0
    for s, f in zip(WINDOW_SIZES, filt):
        acc += f
        f_bounds.append((acc, s))

    def kernel(mw_ref, x_ref, invw_ref, wcat_ref, boe_w_ref, boe_b_ref,
               cw_conv_ref, cw_boe_ref, cb_ref, out_ref):
        max_words_i = mw_ref[0]
        xt = x_ref[...]                                         # (TB, W, E) bf16
        x2d = xt.reshape(TB * W, E)

        # Conv stack: smax fused matmuls; realign each shift-k product with an
        # XLU sublane roll (row i accumulates y_k[i + k]).
        z = jnp.dot(x2d, wcat_ref[0], preferred_element_type=jnp.float32)
        for k in range(1, smax):
            yk = jnp.dot(x2d, wcat_ref[k], preferred_element_type=jnp.float32)
            z = z + pltpu.roll(yk, TB * W - k, 0)
        z = jnp.maximum(z, 0.0).reshape(TB, W, Fsum)            # ReLU (conv bias = 0)

        # Only window positions fully inside the first max_words tokens are
        # valid (matches torch slicing docs[:, :max_words]).  Invalid and
        # roll-wrapped positions are forced to 0, which never changes the max
        # since ReLU >= 0 and max_words >= smax guarantees >= 1 valid window.
        pos = jax.lax.broadcasted_iota(jnp.int32, (W, Fsum), 0)
        col = jax.lax.broadcasted_iota(jnp.int32, (W, Fsum), 1)
        s_col = jnp.full((W, Fsum), WINDOW_SIZES[-1], jnp.int32)
        for end, s in reversed(f_bounds[:-1]):
            s_col = jnp.where(col < end, s, s_col)
        valid = (pos <= max_words_i - s_col).astype(jnp.float32)
        pooled = jnp.max(z * valid[None], axis=1)               # (TB, Fsum)

        # Bag-of-embeddings branch (f32 accumulation on the VPU/EUP).
        bag = jnp.sum(xt.astype(jnp.float32), axis=1) * invw_ref[...]
        boe = jnp.tanh(
            jnp.dot(bag, boe_w_ref[...], preferred_element_type=jnp.float32)
            + boe_b_ref[...])

        # TODO(synk): nn.Dropout is identity in eval mode; not applied here.
        # Fused classifier heads: both tasks in one lane-dense output slab.
        out_ref[...] = (
            jnp.dot(pooled, cw_conv_ref[...], preferred_element_type=jnp.float32)
            + jnp.dot(boe, cw_boe_ref[...], preferred_element_type=jnp.float32)
            + cb_ref[...])

    n_blocks = B_pad // TB

    def _const(shape):
        return pl.BlockSpec(shape, lambda b, mw, _n=len(shape): (0,) * _n)

    grid_spec = pltpu.PrefetchScalarGridSpec(
        num_scalar_prefetch=1,
        grid=(n_blocks,),
        in_specs=[
            pl.BlockSpec((TB, W, E), lambda b, mw: (b, 0, 0)),   # x (tiled)
            pl.BlockSpec((TB, 1), lambda b, mw: (b, 0)),         # 1/wpl (tiled)
            _const(wcat.shape),
            _const(boe_w_b.shape), _const(boe_b_f.shape),
            _const(clsw_conv.shape), _const(clsw_boe.shape), _const(cls_b.shape),
        ],
        out_specs=pl.BlockSpec((TB, n_total), lambda b, mw: (b, 0)),
    )

    flops = (2 * B_pad * W * E * Fsum * smax          # fused conv matmuls
             + 2 * B_pad * E * E                      # bag-of-embeddings dense
             + 2 * B_pad * (Fsum + E) * n_total)      # classifier heads
    bytes_accessed = (x.size * 2 + invw.size * 4 + wcat.size * 2
                      + boe_w_b.size * 2 + boe_b_f.size * 4
                      + clsw_conv.size * 2 + clsw_boe.size * 2 + cls_b.size * 4
                      + B_pad * n_total * 4)

    out = pl.pallas_call(
        kernel,
        out_shape=jax.ShapeDtypeStruct((B_pad, n_total), jnp.float32),
        grid_spec=grid_spec,
        compiler_params=pltpu.CompilerParams(
            dimension_semantics=("parallel",),
            vmem_limit_bytes=32 * 1024 * 1024),
        cost_estimate=pl.CostEstimate(
            flops=flops, transcendentals=B_pad * E,
            bytes_accessed=bytes_accessed),
    )(max_words, x, invw, wcat, boe_w_b, boe_b_f, clsw_conv, clsw_boe, cls_b)

    logits = {}
    off = 0
    for j, n in enumerate(n_cls):
        logits[f"task{j}"] = out[:B, off:off + n]
        off += n
    return logits


def init_params(key, vocab, E, window_sizes, num_filters, num_classes,
                scale=20.0):
    n_keys = 1 + len(window_sizes) + 1 + len(num_classes)
    keys = jax.random.split(key, n_keys)
    k_emb = keys[0]
    k_conv = keys[1:1 + len(window_sizes)]
    k_boe = keys[1 + len(window_sizes)]
    k_cls = keys[2 + len(window_sizes):]

    # embedding matrix: same normalization as MTCNN.__init__
    emb = jax.random.normal(k_emb, (vocab, E), jnp.float32)
    emb = emb - emb.mean(axis=0)
    emb = emb / (jnp.std(emb, axis=0, ddof=1) * scale)
    emb = emb.at[0].set(0.0)

    conv = []
    for kk, s, f in zip(k_conv, window_sizes, num_filters):
        fan_in, fan_out = E * s, f * s
        bound = (6.0 / (fan_in + fan_out)) ** 0.5
        w_torch = jax.random.uniform(kk, (f, E, s), jnp.float32, -bound, bound)
        conv.append(jnp.transpose(w_torch, (2, 1, 0)))           # (s, E, f)

    bound = (6.0 / (E + E)) ** 0.5
    boe_w = jax.random.uniform(k_boe, (E, E), jnp.float32, -bound, bound).T
    boe_b = jnp.zeros((1, E), jnp.float32)

    D = sum(num_filters) + E
    cls = []
    for kk, n in zip(k_cls, num_classes):
        bound = (6.0 / (D + n)) ** 0.5
        w = jax.random.uniform(kk, (n, D), jnp.float32, -bound, bound).T
        cls.append((w, jnp.zeros((1, n), jnp.float32)))
    return {"embedding": emb, "conv": conv, "boe": (boe_w, boe_b), "cls": cls}


def reference_forward(docs, params):
    """Pure-JAX faithful re-implementation of the torch forward (eval mode)."""
    emb = params['embedding']
    mask = (docs != 0)
    wpl = mask.sum(-1)
    mw = int(jnp.maximum(wpl.max(), 5))
    d = docs[:, :mw]
    m = (d != 0).astype(jnp.float32)[..., None]
    x = emb[d] * m
    pooled = []
    for s, w in zip(WINDOW_SIZES, params['conv']):
        L = mw - s + 1
        rows = []
        for t in range(L):
            acc = sum(x[:, t + k, :] @ w[k] for k in range(s))
            rows.append(acc)
        c = jnp.maximum(jnp.stack(rows, axis=1), 0.0)
        pooled.append(c.max(axis=1))
    bag = x.sum(axis=1) / wpl[:, None].astype(jnp.float32)
    boe_w, boe_b = params['boe']
    bag = jnp.tanh(bag @ boe_w + boe_b)
    doc = jnp.concatenate(pooled + [bag], axis=-1)
    return {f"task{j}": doc @ w + b
            for j, (w, b) in enumerate(params['cls'])}


if __name__ == "__main__":
    B, W, E, V = 2, 16, 32, 50
    num_filters = [16, 16, 16]
    num_classes = [4, 6]

    key = jax.random.PRNGKey(0)
    k_doc, k_par = jax.random.split(key)
    params = init_params(k_par, V, E, WINDOW_SIZES, num_filters, num_classes)

    docs = jax.random.randint(k_doc, (B, W), 1, V)
    lengths = jnp.array([10, 13])
    pos = jnp.arange(W)[None, :]
    docs = jnp.where(pos < lengths[:, None], docs, 0).astype(jnp.int32)

    forward = jax.jit(mtcnn_forward)
    out = jax.block_until_ready(forward(docs, params))

    ref = reference_forward(docs, params)
    for t in out:
        assert jnp.allclose(out[t], ref[t], atol=3e-2, rtol=3e-2), t
    print("KERNEL_OK")
</pallas_src>

<mosaic_0001>
module attributes {stable_mosaic.version = 11 : i64} {
  func.func @kernel(%arg0: i32, %arg1: memref<1xi32, #tpu.memory_space<smem>>, %arg2: memref<8x16x32xbf16, #tpu.memory_space<vmem>>, %arg3: memref<8x1xf32, #tpu.memory_space<vmem>>, %arg4: memref<5x32x48xbf16, #tpu.memory_space<vmem>>, %arg5: memref<32x32xbf16, #tpu.memory_space<vmem>>, %arg6: memref<1x32xf32, #tpu.memory_space<vmem>>, %arg7: memref<48x10xbf16, #tpu.memory_space<vmem>>, %arg8: memref<32x10xbf16, #tpu.memory_space<vmem>>, %arg9: memref<1x10xf32, #tpu.memory_space<vmem>>, %arg10: memref<8x10xf32, #tpu.memory_space<vmem>>) attributes {dimension_semantics = [#tpu.dimension_semantics<parallel>], iteration_bounds = array<i64: 1>, scalar_prefetch = 1 : i64, scratch_operands = 0 : i64, tpu.core_type = #tpu.core_type<tc>, window_params = [{transform_indices = @transform_0, window_bounds = array<i64: 8, 16, 32>}, {transform_indices = @transform_1, window_bounds = array<i64: 8, 1>}, {pipeline_mode = #tpu.pipeline_mode<synchronous>, transform_indices = @transform_2, window_bounds = array<i64: 5, 32, 48>}, {pipeline_mode = #tpu.pipeline_mode<synchronous>, transform_indices = @transform_3, window_bounds = array<i64: 32, 32>}, {pipeline_mode = #tpu.pipeline_mode<synchronous>, transform_indices = @transform_4, window_bounds = array<i64: 1, 32>}, {pipeline_mode = #tpu.pipeline_mode<synchronous>, transform_indices = @transform_5, window_bounds = array<i64: 48, 10>}, {pipeline_mode = #tpu.pipeline_mode<synchronous>, transform_indices = @transform_6, window_bounds = array<i64: 32, 10>}, {pipeline_mode = #tpu.pipeline_mode<synchronous>, transform_indices = @transform_7, window_bounds = array<i64: 1, 10>}, {transform_indices = @transform_8, window_bounds = array<i64: 8, 10>}]} {
    %c0 = arith.constant 0 : index
    %0 = memref.load %arg1[%c0] : memref<1xi32, #tpu.memory_space<smem>>
    %c0_0 = arith.constant 0 : index
    %c0_1 = arith.constant 0 : index
    %c0_2 = arith.constant 0 : index
    %1 = vector.load %arg2[%c0_0, %c0_1, %c0_2] : memref<8x16x32xbf16, #tpu.memory_space<vmem>>, vector<8x16x32xbf16>
    %2 = vector.shape_cast %1 : vector<8x16x32xbf16> to vector<128x32xbf16>
    %c0_3 = arith.constant 0 : index
    %c0_4 = arith.constant 0 : index
    %c0_5 = arith.constant 0 : index
    %3 = vector.load %arg4[%c0_3, %c0_4, %c0_5] : memref<5x32x48xbf16, #tpu.memory_space<vmem>>, vector<1x32x48xbf16>
    %4 = vector.shape_cast %3 : vector<1x32x48xbf16> to vector<32x48xbf16>
    %cst = arith.constant dense<0.000000e+00> : vector<128x48xf32>
    %5 = tpu.matmul %2, %4, %cst {dimension_numbers = #tpu.dot_dimension_numbers<[1], [0], [0], [1], [0, 0, 1, 1], [], []>} : vector<128x32xbf16>, vector<32x48xbf16>, vector<128x48xf32> -> vector<128x48xf32>
    %c1 = arith.constant 1 : index
    %c0_6 = arith.constant 0 : index
    %c0_7 = arith.constant 0 : index
    %6 = vector.load %arg4[%c1, %c0_6, %c0_7] : memref<5x32x48xbf16, #tpu.memory_space<vmem>>, vector<1x32x48xbf16>
    %7 = vector.shape_cast %6 : vector<1x32x48xbf16> to vector<32x48xbf16>
    %cst_8 = arith.constant dense<0.000000e+00> : vector<128x48xf32>
    %8 = tpu.matmul %2, %7, %cst_8 {dimension_numbers = #tpu.dot_dimension_numbers<[1], [0], [0], [1], [0, 0, 1, 1], [], []>} : vector<128x32xbf16>, vector<32x48xbf16>, vector<128x48xf32> -> vector<128x48xf32>
    %c127_i32 = arith.constant 127 : i32
    %9 = tpu.dynamic_rotate %8 by %c127_i32 dim 0 : vector<128x48xf32>, i32 -> vector<128x48xf32>
    %10 = arith.addf %5, %9 : vector<128x48xf32>
    %c2 = arith.constant 2 : index
    %c0_9 = arith.constant 0 : index
    %c0_10 = arith.constant 0 : index
    %11 = vector.load %arg4[%c2, %c0_9, %c0_10] : memref<5x32x48xbf16, #tpu.memory_space<vmem>>, vector<1x32x48xbf16>
    %12 = vector.shape_cast %11 : vector<1x32x48xbf16> to vector<32x48xbf16>
    %cst_11 = arith.constant dense<0.000000e+00> : vector<128x48xf32>
    %13 = tpu.matmul %2, %12, %cst_11 {dimension_numbers = #tpu.dot_dimension_numbers<[1], [0], [0], [1], [0, 0, 1, 1], [], []>} : vector<128x32xbf16>, vector<32x48xbf16>, vector<128x48xf32> -> vector<128x48xf32>
    %c126_i32 = arith.constant 126 : i32
    %14 = tpu.dynamic_rotate %13 by %c126_i32 dim 0 : vector<128x48xf32>, i32 -> vector<128x48xf32>
    %15 = arith.addf %10, %14 : vector<128x48xf32>
    %c3 = arith.constant 3 : index
    %c0_12 = arith.constant 0 : index
    %c0_13 = arith.constant 0 : index
    %16 = vector.load %arg4[%c3, %c0_12, %c0_13] : memref<5x32x48xbf16, #tpu.memory_space<vmem>>, vector<1x32x48xbf16>
    %17 = vector.shape_cast %16 : vector<1x32x48xbf16> to vector<32x48xbf16>
    %cst_14 = arith.constant dense<0.000000e+00> : vector<128x48xf32>
    %18 = tpu.matmul %2, %17, %cst_14 {dimension_numbers = #tpu.dot_dimension_numbers<[1], [0], [0], [1], [0, 0, 1, 1], [], []>} : vector<128x32xbf16>, vector<32x48xbf16>, vector<128x48xf32> -> vector<128x48xf32>
    %c125_i32 = arith.constant 125 : i32
    %19 = tpu.dynamic_rotate %18 by %c125_i32 dim 0 : vector<128x48xf32>, i32 -> vector<128x48xf32>
    %20 = arith.addf %15, %19 : vector<128x48xf32>
    %c4 = arith.constant 4 : index
    %c0_15 = arith.constant 0 : index
    %c0_16 = arith.constant 0 : index
    %21 = vector.load %arg4[%c4, %c0_15, %c0_16] : memref<5x32x48xbf16, #tpu.memory_space<vmem>>, vector<1x32x48xbf16>
    %22 = vector.shape_cast %21 : vector<1x32x48xbf16> to vector<32x48xbf16>
    %cst_17 = arith.constant dense<0.000000e+00> : vector<128x48xf32>
    %23 = tpu.matmul %2, %22, %cst_17 {dimension_numbers = #tpu.dot_dimension_numbers<[1], [0], [0], [1], [0, 0, 1, 1], [], []>} : vector<128x32xbf16>, vector<32x48xbf16>, vector<128x48xf32> -> vector<128x48xf32>
    %c124_i32 = arith.constant 124 : i32
    %24 = tpu.dynamic_rotate %23 by %c124_i32 dim 0 : vector<128x48xf32>, i32 -> vector<128x48xf32>
    %25 = arith.addf %20, %24 : vector<128x48xf32>
    %cst_18 = arith.constant 0.000000e+00 : f32
    %26 = vector.broadcast %cst_18 : f32 to vector<128x48xf32>
    %27 = arith.maximumf %25, %26 : vector<128x48xf32>
    %28 = vector.shape_cast %27 : vector<128x48xf32> to vector<8x16x48xf32>
    %29 = tpu.iota {dimensions = array<i32: 0>} : vector<16x48xi32>
    %30 = tpu.iota {dimensions = array<i32: 1>} : vector<16x48xi32>
    %c5_i32 = arith.constant 5 : i32
    %31 = vector.broadcast %c5_i32 : i32 to vector<16x48xi32>
    %c32_i32 = arith.constant 32 : i32
    %32 = vector.broadcast %c32_i32 : i32 to vector<16x48xi32>
    %33 = arith.cmpi slt, %30, %32 : vector<16x48xi32>
    %c4_i32 = arith.constant 4 : i32
    %34 = vector.broadcast %c4_i32 : i32 to vector<16x48xi32>
    %35 = arith.select %33, %34, %31 : vector<16x48xi1>, vector<16x48xi32>
    %c16_i32 = arith.constant 16 : i32
    %36 = vector.broadcast %c16_i32 : i32 to vector<16x48xi32>
    %37 = arith.cmpi slt, %30, %36 : vector<16x48xi32>
    %c3_i32 = arith.constant 3 : i32
    %38 = vector.broadcast %c3_i32 : i32 to vector<16x48xi32>
    %39 = arith.select %37, %38, %35 : vector<16x48xi1>, vector<16x48xi32>
    %40 = vector.broadcast %0 : i32 to vector<16x48xi32>
    %41 = arith.subi %40, %39 : vector<16x48xi32>
    %42 = arith.cmpi sle, %29, %41 : vector<16x48xi32>
    %43 = arith.extui %42 : vector<16x48xi1> to vector<16x48xi32>
    %44 = arith.sitofp %43 : vector<16x48xi32> to vector<16x48xf32>
    %45 = vector.shape_cast %44 : vector<16x48xf32> to vector<1x16x48xf32>
    %46 = vector.broadcast %45 : vector<1x16x48xf32> to vector<8x16x48xf32>
    %47 = arith.mulf %28, %46 : vector<8x16x48xf32>
    %cst_19 = arith.constant dense<0xFF800000> : vector<8x48xf32>
    %48 = vector.multi_reduction <maximumf>, %47, %cst_19 [1] : vector<8x16x48xf32> to vector<8x48xf32>
    %49 = arith.extf %1 : vector<8x16x32xbf16> to vector<8x16x32xf32>
    %cst_20 = arith.constant dense<0.000000e+00> : vector<8x32xf32>
    %50 = vector.multi_reduction <add>, %49, %cst_20 [1] : vector<8x16x32xf32> to vector<8x32xf32>
    %c0_21 = arith.constant 0 : index
    %c0_22 = arith.constant 0 : index
    %51 = vector.load %arg3[%c0_21, %c0_22] : memref<8x1xf32, #tpu.memory_space<vmem>>, vector<8x1xf32>
    %52 = vector.broadcast %51 : vector<8x1xf32> to vector<8x32xf32>
    %53 = arith.mulf %50, %52 : vector<8x32xf32>
    %c0_23 = arith.constant 0 : index
    %c0_24 = arith.constant 0 : index
    %54 = vector.load %arg5[%c0_23, %c0_24] : memref<32x32xbf16, #tpu.memory_space<vmem>>, vector<32x32xbf16>
    %cst_25 = arith.constant dense<0.000000e+00> : vector<8x32xf32>
    %55 = tpu.matmul %53, %54, %cst_25 {dimension_numbers = #tpu.dot_dimension_numbers<[1], [0], [0], [1], [0, 0, 1, 1], [], []>} : vector<8x32xf32>, vector<32x32xbf16>, vector<8x32xf32> -> vector<8x32xf32>
    %c0_26 = arith.constant 0 : index
    %c0_27 = arith.constant 0 : index
    %56 = vector.load %arg6[%c0_26, %c0_27] : memref<1x32xf32, #tpu.memory_space<vmem>>, vector<1x32xf32>
    %57 = vector.broadcast %56 : vector<1x32xf32> to vector<8x32xf32>
    %58 = arith.addf %55, %57 : vector<8x32xf32>
    %59 = math.tanh %58 : vector<8x32xf32>
    %c0_28 = arith.constant 0 : index
    %c0_29 = arith.constant 0 : index
    %60 = vector.load %arg7[%c0_28, %c0_29] : memref<48x10xbf16, #tpu.memory_space<vmem>>, vector<48x10xbf16>
    %cst_30 = arith.constant dense<0.000000e+00> : vector<8x10xf32>
    %61 = tpu.matmul %48, %60, %cst_30 {dimension_numbers = #tpu.dot_dimension_numbers<[1], [0], [0], [1], [0, 0, 1, 1], [], []>} : vector<8x48xf32>, vector<48x10xbf16>, vector<8x10xf32> -> vector<8x10xf32>
    %c0_31 = arith.constant 0 : index
    %c0_32 = arith.constant 0 : index
    %62 = vector.load %arg8[%c0_31, %c0_32] : memref<32x10xbf16, #tpu.memory_space<vmem>>, vector<32x10xbf16>
    %cst_33 = arith.constant dense<0.000000e+00> : vector<8x10xf32>
    %63 = tpu.matmul %59, %62, %cst_33 {dimension_numbers = #tpu.dot_dimension_numbers<[1], [0], [0], [1], [0, 0, 1, 1], [], []>} : vector<8x32xf32>, vector<32x10xbf16>, vector<8x10xf32> -> vector<8x10xf32>
    %64 = arith.addf %61, %63 : vector<8x10xf32>
    %c0_34 = arith.constant 0 : index
    %c0_35 = arith.constant 0 : index
    %65 = vector.load %arg9[%c0_34, %c0_35] : memref<1x10xf32, #tpu.memory_space<vmem>>, vector<1x10xf32>
    %66 = vector.broadcast %65 : vector<1x10xf32> to vector<8x10xf32>
    %67 = arith.addf %64, %66 : vector<8x10xf32>
    %c0_36 = arith.constant 0 : index
    %c0_37 = arith.constant 0 : index
    %68 = vector.load %arg10[%c0_36, %c0_37] : memref<8x10xf32, #tpu.memory_space<vmem>>, vector<8x10xf32>
    tpu.vector_store %arg10[%c0_36, %c0_37], %67 {strides = array<i32>} : memref<8x10xf32, #tpu.memory_space<vmem>>, vector<8x10xf32>,
    return
  }
  func.func @transform_0(%arg0: i32, %arg1: memref<1xi32, #tpu.memory_space<smem>>) -> (i32, i32, i32) {
    %c0_i32 = arith.constant 0 : i32
    %c0_i32_0 = arith.constant 0 : i32
    %c0_i32_1 = arith.constant 0 : i32
    return %arg0, %c0_i32, %c0_i32_0 : i32, i32, i32
  }
  func.func @transform_1(%arg0: i32, %arg1: memref<1xi32, #tpu.memory_space<smem>>) -> (i32, i32) {
    %c0_i32 = arith.constant 0 : i32
    %c0_i32_0 = arith.constant 0 : i32
    return %arg0, %c0_i32 : i32, i32
  }
  func.func @transform_2(%arg0: i32, %arg1: memref<1xi32, #tpu.memory_space<smem>>) -> (i32, i32, i32) {
    %c0_i32 = arith.constant 0 : i32
    %c0_i32_0 = arith.constant 0 : i32
    %c0_i32_1 = arith.constant 0 : i32
    %c0_i32_2 = arith.constant 0 : i32
    return %c0_i32, %c0_i32_0, %c0_i32_1 : i32, i32, i32
  }
  func.func @transform_3(%arg0: i32, %arg1: memref<1xi32, #tpu.memory_space<smem>>) -> (i32, i32) {
    %c0_i32 = arith.constant 0 : i32
    %c0_i32_0 = arith.constant 0 : i32
    %c0_i32_1 = arith.constant 0 : i32
    return %c0_i32, %c0_i32_0 : i32, i32
  }
  func.func @transform_4(%arg0: i32, %arg1: memref<1xi32, #tpu.memory_space<smem>>) -> (i32, i32) {
    %c0_i32 = arith.constant 0 : i32
    %c0_i32_0 = arith.constant 0 : i32
    %c0_i32_1 = arith.constant 0 : i32
    return %c0_i32, %c0_i32_0 : i32, i32
  }
  func.func @transform_5(%arg0: i32, %arg1: memref<1xi32, #tpu.memory_space<smem>>) -> (i32, i32) {
    %c0_i32 = arith.constant 0 : i32
    %c0_i32_0 = arith.constant 0 : i32
    %c0_i32_1 = arith.constant 0 : i32
    return %c0_i32, %c0_i32_0 : i32, i32
  }
  func.func @transform_6(%arg0: i32, %arg1: memref<1xi32, #tpu.memory_space<smem>>) -> (i32, i32) {
    %c0_i32 = arith.constant 0 : i32
    %c0_i32_0 = arith.constant 0 : i32
    %c0_i32_1 = arith.constant 0 : i32
    return %c0_i32, %c0_i32_0 : i32, i32
  }
  func.func @transform_7(%arg0: i32, %arg1: memref<1xi32, #tpu.memory_space<smem>>) -> (i32, i32) {
    %c0_i32 = arith.constant 0 : i32
    %c0_i32_0 = arith.constant 0 : i32
    %c0_i32_1 = arith.constant 0 : i32
    return %c0_i32, %c0_i32_0 : i32, i32
  }
  func.func @transform_8(%arg0: i32, %arg1: memref<1xi32, #tpu.memory_space<smem>>) -> (i32, i32) {
    %c0_i32 = arith.constant 0 : i32
    %c0_i32_0 = arith.constant 0 : i32
    return %arg0, %c0_i32 : i32, i32
  }
}

</mosaic_0001>

<bundles_post_ra>
// kernel: mtcnn_forward.1
= control target key start
LH: loop header
LB: loop body
LE: loop exit
PB: predicated region body
PF: predicated region fallthrough
CT: control target
= control target key end

     0   :  { %v1655_v0 = vmov 0   ;;  %vm110_vm0 = vcmask 261120   ;;  %v1656_v16 = vmov 0.0   ;;  %vm1657_vm1 = vmmov 0   ;;  %s2258_s2 = inlined_call_operand.vmem [shape: f32[8,1], index: 2, kind: input, shape index: {}]   ;;  %s2259_s3 = inlined_call_operand.vmem [shape: bf16[5,32,48], index: 3, kind: input, shape index: {}]   ;;  %s2260_s1 = inlined_call_operand.vmem [shape: bf16[8,16,32], index: 1, kind: input, shape index: {}]   ;;  %s2261_s4 = inlined_call_operand.vmem [shape: bf16[32,32], index: 4, kind: input, shape index: {}]   ;;  %s2262_s7 = inlined_call_operand.vmem [shape: bf16[32,10], index: 7, kind: input, shape index: {}]   ;;  %s2263_s6 = inlined_call_operand.vmem [shape: bf16[48,10], index: 6, kind: input, shape index: {}]   ;;  %s2264_s0 = inlined_call_operand.<no memory space> [shape: s32[1], index: 0, kind: input, shape index: {}]   ;;  %s2265_s5 = inlined_call_operand.vmem [shape: f32[1,32], index: 5, kind: input, shape index: {}]   ;;  %s2266_s8 = inlined_call_operand.vmem [shape: f32[1,10], index: 8, kind: input, shape index: {}]   ;;  %s2267_s9 = inlined_call_operand.vmem [shape: f32[8,10], index: 9, kind: output, shape index: {}]  }
   0x1   :  { %1619 = vset.pattern.permute.xlu0 %v1655_v0  ;;  %v1073_v1 = vld [vmem:[%s2258_s2] sm:$0xff]  ;;  %v1620_v2 = vld [vmem:[%s2259_s3 + $0x10] sm:$0xff]   ;;  %v1622_v4 = vld [vmem:[%s2259_s3 + $0x18] sm:$0xff]   ;;  %vm1121_vm2 = vcmask 1041409   ;;  %vm1124_vm3 = vcmask 1042434   ;;  %vm1127_vm4 = vcmask 1043459  }
   0x2   :  { %1076 = vperm.xlu0 %1619, %v1073_v1   ;;  %v1621_v3 = vld [vmem:[%s2259_s3] sm:$0xff]   ;;  %1492 = vmatprep.subr.bf16.mxu0 %v1620_v2  ;;  %v1623_v5 = vld [vmem:[%s2259_s3 + $0x8] sm:$0xff]   ;;  %v1737_v8 = vld [vmem:[%s2260_s1 + $0x10] sm:$0xff]   ;;  %vm1130_vm5 = vcmask 1044484   ;;  %vm1133_vm6 = vcmask 1045509   ;;  %vm1136_vm7 = vcmask 1046534  }
   0x3   :  { %1493 = vmatpush3.bf16.msra.mxu0 %v1620_v2  ;;  %1512 = vmatprep.subr.bf16.mxu1 %v1621_v3  ;;  %v1727_v6 = vld [vmem:[%s2260_s1] sm:$0xff]   ;;  %v1732_v7 = vld [vmem:[%s2260_s1 + $0x8] sm:$0xff]   ;;  %v1633_v10 = vld [vmem:[%s2259_s3 + $0x30] sm:$0xff]   ;;  %v989_v25 = vunpack.c.l.bf16 %v1737_v8  ;;  %v990_v26 = vunpack.c.h.bf16 %v1737_v8  ;;  %vm1139_vm8 = vcmask 1047559  }
   0x4   :  { %1513 = vmatpush3.bf16.msra.mxu1 %v1621_v3  ;;  %1494 = vmatprep.subr.bf16.mxu0 %v1622_v4  ;;  %v1632_v9 = vld [vmem:[%s2259_s3 + $0x20] sm:$0xff]   ;;  %v1634_v11 = vld [vmem:[%s2259_s3 + $0x28] sm:$0xff]   ;;  %v1635_v12 = vld [vmem:[%s2259_s3 + $0x38] sm:$0xff]   ;;  %v987_v23 = vunpack.c.l.bf16 %v1732_v7  ;;  %v988_v24 = vunpack.c.h.bf16 %v1732_v7  ;;  %v985_v29 = vunpack.c.l.bf16 %v1727_v6  ;;  %v986_v30 = vunpack.c.h.bf16 %v1727_v6 }
   0x5   :  { %1514 = vmatprep.subr.bf16.mxu1 %v1623_v5  ;;  %1496 = vmatprep.mubr.msk.bf16.mxu0 %vm110_vm0, %v1727_v6  ;;  %v1764_v13 = vld [vmem:[%s2260_s1 + $0x18] sm:$0xff]   ;;  %v1771_v14 = vld [vmem:[%s2260_s1 + $0x20] sm:$0xff]   ;;  %v1786_v17 = vld [vmem:[%s2260_s1 + $0x28] sm:$0xff]   ;;  %v1019_v37 = vsel %vm110_vm0, %v989_v25, 0.0  ;;  %v1020_v38 = vsel %vm110_vm0, %v990_v26, 0.0 }
   0x6   :  { %1516 = vmatprep.mubr.msk.bf16.mxu1 %vm110_vm0, %v1727_v6  ;;  %v1636_v15 = vld [vmem:[%s2259_s3 + $0x40] sm:$0xff]   ;;  %v1793_v18 = vld [vmem:[%s2260_s1 + $0x30] sm:$0xff]   ;;  %v1804_v19 = vld [vmem:[%s2260_s1 + $0x38] sm:$0xff]   ;;  %v991_v27 = vunpack.c.l.bf16 %v1764_v13  ;;  %v992_v28 = vunpack.c.h.bf16 %v1764_v13  ;;  %v1010_v31 = vsel %vm110_vm0, %v987_v23, 0.0  ;;  %v1011_v32 = vsel %vm110_vm0, %v988_v24, 0.0 }
   0x7   :  { %1495 = vmatpush3.bf16.msra.mxu0 %v1622_v4  ;;  %v1637_v20 = vld [vmem:[%s2259_s3 + $0x48] sm:$0xff]   ;;  %v1638_v21 = vld [vmem:[%s2261_s4] sm:$0xff]   ;;  %v993_v33 = vunpack.c.l.bf16 %v1771_v14  ;;  %v994_v34 = vunpack.c.h.bf16 %v1771_v14  ;;  %v995_v35 = vunpack.c.l.bf16 %v1786_v17  ;;  %v996_v36 = vunpack.c.h.bf16 %v1786_v17 }
   0x8   :  { %1515 = vmatpush3.bf16.msra.mxu1 %v1623_v5  ;;  %1532 = vmatprep.subr.bf16.mxu0 %v1632_v9  ;;  %v1639_v22 = vld [vmem:[%s2261_s4 + $0x8] sm:$0xff]   ;;  %v1028_v39 = vsel %vm110_vm0, %v991_v27, 0.0  ;;  %v1029_v40 = vsel %vm110_vm0, %v992_v28, 0.0  ;;  %v997_v41 = vunpack.c.l.bf16 %v1793_v18  ;;  %v998_v42 = vunpack.c.h.bf16 %v1793_v18 }
   0x9   :  { %1552 = vmatprep.subr.bf16.mxu1 %v1633_v10  ;;  %v999_v43 = vunpack.c.l.bf16 %v1804_v19  ;;  %v1000_v44 = vunpack.c.h.bf16 %v1804_v19  ;;  %v1001_v45 = vsel %vm110_vm0, %v985_v29, 0.0  ;;  %v1002_v46 = vsel %vm110_vm0, %v986_v30, 0.0 }
   0xa   :  { %1497 = vmatmul.mubr.msk.bf16.vlgmr.msra.gmra.mrb[0].mxu0 %vm110_vm0, %v1732_v7  ;;  %v1037_v47 = vsel %vm110_vm0, %v993_v33, 0.0  ;;  %v1038_v48 = vsel %vm110_vm0, %v994_v34, 0.0  ;;  %v1046_v49 = vsel %vm110_vm0, %v995_v35, 0.0  ;;  %v1047_v50 = vsel %vm110_vm0, %v996_v36, 0.0 }
   0xb   :  { %1517 = vmatmul.mubr.msk.bf16.vlgmr.msra.gmra.mrb[0].mxu1 %vm110_vm0, %v1732_v7  ;;  %1500 = vmatprep.mubr.msk.bf16.mxu0 %vm110_vm0, %v1737_v8  ;;  %v1012_v51 = vadd.f32 %v1011_v32, %v1010_v31  ;;  %v1021_v52 = vadd.f32 %v1020_v38, %v1019_v37  ;;  %v1030_v53 = vadd.f32 %v1029_v40, %v1028_v39  ;;  %v1055_v54 = vsel %vm110_vm0, %v997_v41, 0.0 }
   0xc   :  { %1520 = vmatprep.mubr.msk.bf16.mxu1 %vm110_vm0, %v1737_v8  ;;  %1533 = vmatpush3.bf16.msra.mxu0 %v1632_v9  ;;  %v1056_v55 = vsel %vm110_vm0, %v998_v42, 0.0  ;;  %v1064_v56 = vsel %vm110_vm0, %v999_v43, 0.0  ;;  %v1065_v57 = vsel %vm110_vm0, %v1000_v44, 0.0  ;;  %v1003_v58 = vadd.f32 %v1002_v46, %v1001_v45 }
   0xd   :  { %1553 = vmatpush3.bf16.msra.mxu1 %v1633_v10  ;;  %1534 = vmatprep.subr.bf16.mxu0 %v1634_v11  ;;  %v1039_v59 = vadd.f32 %v1038_v48, %v1037_v47  ;;  %v1048_v60 = vadd.f32 %v1047_v50, %v1046_v49  ;;  %v1057_v61 = vadd.f32 %v1056_v55, %v1055_v54  ;;  %v1013_v63 = vrot.slane %v1012_v51, 4 }
   0xe   :  { %1554 = vmatprep.subr.bf16.mxu1 %v1635_v12  ;;  %v1066_v62 = vadd.f32 %v1065_v57, %v1064_v56  ;;  %v1022_v0 = vrot.slane %v1021_v52, 4  ;;  %v1031_v1 = vrot.slane %v1030_v53, 4  ;;  %v1004_v2 = vrot.slane %v1003_v58, 4 }
   0xf   :  { %v1040_v3 = vrot.slane %v1039_v59, 4  ;;  %v1049_v4 = vrot.slane %v1048_v60, 4  ;;  %v1058_v5 = vrot.slane %v1057_v61, 4 }
  0x10   :  { %1535 = vmatpush3.bf16.msra.mxu0 %v1634_v11  ;;  %v1032_v9 = vadd.f32 %v1031_v1, %v1030_v53  ;;  %v1005_v10 = vadd.f32 %v1004_v2, %v1003_v58 }
  0x11   :  { %1555 = vmatpush3.bf16.msra.mxu1 %v1635_v12  ;;  %1572 = vmatprep.subr.bf16.mxu0 %v1636_v15  ;;  %v1041_v11 = vadd.f32 %v1040_v3, %v1039_v59  ;;  %v1050_v12 = vadd.f32 %v1049_v4, %v1048_v60 }
  0x12   :  { %1501 = vmatmul.mubr.msk.bf16.gmra.mrb[4].mxu0 %vm110_vm0, %v1764_v13  ;;  %1592 = vmatprep.subr.bf16.mxu1 %v1656_v16 }
  0x13   :  { %1521 = vmatmul.mubr.msk.bf16.gmra.mrb[4].mxu1 %vm110_vm0, %v1764_v13  ;;  %1504 = vmatprep.mubr.msk.bf16.mxu0 %vm110_vm0, %v1771_v14 }
  0x14   :  { %1524 = vmatprep.mubr.msk.bf16.mxu1 %vm110_vm0, %v1771_v14 }
  0x1a   :  { %1505 = vmatmul.mubr.msk.bf16.gmra.mrb[8].mxu0 %vm110_vm0, %v1786_v17 }
  0x1b   :  { %1525 = vmatmul.mubr.msk.bf16.gmra.mrb[8].mxu1 %vm110_vm0, %v1786_v17  ;;  %1508 = vmatprep.mubr.msk.bf16.mxu0 %vm110_vm0, %v1793_v18 }
  0x1c   :  { %1528 = vmatprep.mubr.msk.bf16.mxu1 %vm110_vm0, %v1793_v18 }
  0x22   :  { %1509 = vmatmul.mubr.msk.bf16.gmra.mrb[12].mxu0 %vm110_vm0, %v1804_v19 }
  0x23   :  { %1529 = vmatmul.mubr.msk.bf16.gmra.mrb[12].mxu1 %vm110_vm0, %v1804_v19  ;;  %1536 = vmatprep.mubr.msk.bf16.mxu0 %vm110_vm0, %v1727_v6 }
  0x24   :  { %1556 = vmatprep.mubr.msk.bf16.mxu1 %vm110_vm0, %v1727_v6 }
  0x2a   :  { %1537 = vmatmul.mubr.msk.bf16.vlgmr.msra.gmra.mrb[16].mxu0 %vm110_vm0, %v1732_v7 }
  0x2b   :  { %1557 = vmatmul.mubr.msk.bf16.vlgmr.msra.gmra.mrb[16].mxu1 %vm110_vm0, %v1732_v7  ;;  %1540 = vmatprep.mubr.msk.bf16.mxu0 %vm110_vm0, %v1737_v8 }
  0x2c   :  { %1560 = vmatprep.mubr.msk.bf16.mxu1 %vm110_vm0, %v1737_v8  ;;  %1573 = vmatpush3.bf16.msra.mxu0 %v1636_v15 }
  0x2d   :  { %1574 = vmatprep.subr.bf16.mxu0 %v1637_v20  ;;  %1593 = vmatpush3.bf16.msra.mxu1 %v1638_v21  ;;  %v1051_v21 = vrot.slane %v1050_v12, 2 }
  0x2e   :  { %1594 = vmatprep.subr.bf16.mxu1 %v1656_v16 }
  0x2f   :  { %v1052_v28 = vadd.f32 %v1051_v21, %v1050_v12 }
  0x30   :  { %1575 = vmatpush3.bf16.msra.mxu0 %v1637_v20  ;;  %v1042_v20 = vrot.slane %v1041_v11, 2 }
  0x31   :  { %1595 = vmatpush3.bf16.msra.mxu1 %v1639_v22  ;;  %v1053_v37 = vrot.slane %v1052_v28, 1 }
  0x32   :  { %1541 = vmatmul.mubr.msk.bf16.gmra.mrb[20].mxu0 %vm110_vm0, %v1764_v13  ;;  %1599 = vmatprep.subr.bf16.mxu1 %v1656_v16  ;;  %v1043_v27 = vadd.f32 %v1042_v20, %v1041_v11 }
  0x33   :  { %1561 = vmatmul.mubr.msk.bf16.gmra.mrb[20].mxu1 %vm110_vm0, %v1764_v13  ;;  %1544 = vmatprep.mubr.msk.bf16.mxu0 %vm110_vm0, %v1771_v14  ;;  %v1054_v46 = vadd.f32 %v1053_v37, %v1052_v28 }
  0x34   :  { %1564 = vmatprep.mubr.msk.bf16.mxu1 %vm110_vm0, %v1771_v14  ;;  %v1044_v36 = vrot.slane %v1043_v27, 1 }
  0x36   :  { %v1045_v45 = vadd.f32 %v1044_v36, %v1043_v27 }
  0x3a   :  { %1545 = vmatmul.mubr.msk.bf16.gmra.mrb[24].mxu0 %vm110_vm0, %v1786_v17 }
  0x3b   :  { %1565 = vmatmul.mubr.msk.bf16.gmra.mrb[24].mxu1 %vm110_vm0, %v1786_v17  ;;  %1548 = vmatprep.mubr.msk.bf16.mxu0 %vm110_vm0, %v1793_v18 }
  0x3c   :  { %1568 = vmatprep.mubr.msk.bf16.mxu1 %vm110_vm0, %v1793_v18 }
  0x42   :  { %1549 = vmatmul.mubr.msk.bf16.gmra.mrb[28].mxu0 %vm110_vm0, %v1804_v19 }
  0x43   :  { %1569 = vmatmul.mubr.msk.bf16.gmra.mrb[28].mxu1 %vm110_vm0, %v1804_v19  ;;  %1576 = vmatprep.mubr.msk.bf16.mxu0 %vm110_vm0, %v1727_v6  ;;  %v1067_v6 = vrot.slane %v1066_v62, 4 }
  0x44   :  { %1596 = vmatprep.mubr.msk.f32.mxu1 %vm1657_vm1, %v1656_v16 }
  0x4a   :  { %1577 = vmatmul.mubr.msk.bf16.vlgmr.msra.gmra.mrb[32].mxu0 %vm110_vm0, %v1732_v7  ;;  %v1014_v7 = vadd.f32 %v1013_v63, %v1012_v51 }
  0x4b   :  { %1580 = vmatprep.mubr.msk.bf16.mxu0 %vm110_vm0, %v1737_v8  ;;  %v1023_v8 = vadd.f32 %v1022_v0, %v1021_v52 }
  0x4c   :  { %v1015_v15 = vrot.slane %v1014_v7, 2 }
  0x4e   :  { %v1016_v24 = vadd.f32 %v1015_v15, %v1014_v7 }
  0x50   :  { %v1017_v32 = vrot.slane %v1016_v24, 1 }
  0x52   :  { %1581 = vmatmul.mubr.msk.bf16.gmra.mrb[36].mxu0 %vm110_vm0, %v1764_v13  ;;  %v1059_v13 = vadd.f32 %v1058_v5, %v1057_v61  ;;  %v1018_v40 = vadd.f32 %v1017_v32, %v1016_v24 }
  0x53   :  { %1584 = vmatprep.mubr.msk.bf16.mxu0 %vm110_vm0, %v1771_v14  ;;  %v1068_v14 = vadd.f32 %v1067_v6, %v1066_v62 }
  0x54   :  { %v1060_v22 = vrot.slane %v1059_v13, 2 }
  0x55   :  { %v1069_v23 = vrot.slane %v1068_v14, 2 }
  0x56   :  { %v1061_v30 = vadd.f32 %v1060_v22, %v1059_v13 }
  0x57   :  { %v1070_v31 = vadd.f32 %v1069_v23, %v1068_v14  ;;  %v248_v14 = vlaneseq }
  0x58   :  { %v1062_v38 = vrot.slane %v1061_v30, 1 }
  0x59   :  { %v1071_v39 = vrot.slane %v1070_v31, 1  ;;  %v1916_v15 = vshrl.u32 %v248_v14, 7 }
  0x5a   :  { %1585 = vmatmul.mubr.msk.bf16.gmra.mrb[40].mxu0 %vm110_vm0, %v1786_v17  ;;  %v1024_v17 = vrot.slane %v1023_v8, 2  ;;  %v1063_v53 = vadd.f32 %v1062_v38, %v1061_v30 }
  0x5b   :  { %1588 = vmatprep.mubr.msk.bf16.mxu0 %vm110_vm0, %v1793_v18  ;;  %v1033_v18 = vrot.slane %v1032_v9, 2  ;;  %v1072_v54 = vadd.f32 %v1071_v39, %v1070_v31  ;;  %vm250_vm9 = vcmp.lt.s32.totalorder %v1916_v15, 7  ;;  %vm506_vm10 = vcmp.lt.s32.totalorder %v1916_v15, 6 }
  0x5c   :  { %v1025_v25 = vadd.f32 %v1024_v17, %v1023_v8  ;;  %vm669_vm11 = vcmp.lt.s32.totalorder %v1916_v15, 5  ;;  %vm832_vm14 = vcmp.lt.s32.totalorder %v1916_v15, 4 }
  0x5d   :  { %v1034_v26 = vadd.f32 %v1033_v18, %v1032_v9 }
  0x5e   :  { %v1026_v33 = vrot.slane %v1025_v25, 1 }
  0x5f   :  { %v1035_v34 = vrot.slane %v1034_v26, 1 }
  0x60   :  { %v1027_v41 = vadd.f32 %v1026_v33, %v1025_v25 }
  0x61   :  { %v1036_v42 = vadd.f32 %v1035_v34, %v1034_v26 }
  0x62   :  { %1589 = vmatmul.mubr.msk.bf16.gmra.mrb[44].mxu0 %vm110_vm0, %v1804_v19  ;;  %v1006_v19 = vrot.slane %v1005_v10, 2 }
  0x64   :  { %v1007_v29 = vadd.f32 %v1006_v19, %v1005_v10 }
  0x66   :  { %v1008_v35 = vrot.slane %v1007_v29, 1 }
  0x68   :  { %v1009_v44 = vadd.f32 %v1008_v35, %v1007_v29  ;;  %v1640_v35 = vld [vmem:[%s2262_s7] sm:$0xff]  }
  0x81   :  { %v1077_v43 = vpop.permute.xlu0 %1076 }
  0x82   :  { %v1078_v47 = vrot.slane %v1077_v43, 1  ;;  %v1079_v48 = vrot.slane %v1077_v43, 2  ;;  %v1080_v49 = vrot.slane %v1077_v43, 3  ;;  %v1081_v50 = vrot.slane %v1077_v43, 4 }
  0x83   :  { %v1082_v51 = vrot.slane %v1077_v43, 5  ;;  %v1083_v52 = vrot.slane %v1077_v43, 6  ;;  %v1084_v58 = vrot.slane %v1077_v43, 7  ;;  %v1093_v60 = vmul.f32 %v1077_v43, %v1009_v44 }
  0x84   :  { %v1094_v55 = vmul.f32 %v1078_v47, %v1018_v40  ;;  %v1095_v56 = vmul.f32 %v1079_v48, %v1027_v41  ;;  %v1096_v57 = vmul.f32 %v1080_v49, %v1036_v42  ;;  %v1097_v59 = vmul.f32 %v1081_v50, %v1045_v45  ;;  %v1641_v40 = vld [vmem:[%s2262_s7 + $0x8] sm:$0xff]  }
  0x85   :  { %v1098_v61 = vmul.f32 %v1082_v51, %v1054_v46  ;;  %v1099_v0 = vmul.f32 %v1083_v52, %v1063_v53  ;;  %v1100_v3 = vmul.f32 %v1084_v58, %v1072_v54 }
  0x86   :  { %v1120_v62 = vrot.slane %v1094_v55, 7  ;;  %v1123_v63 = vrot.slane %v1095_v56, 6  ;;  %v1126_v2 = vrot.slane %v1096_v57, 5  ;;  %v1129_v4 = vrot.slane %v1097_v59, 4 }
  0x87   :  { %v1132_v7 = vrot.slane %v1098_v61, 3  ;;  %v1135_v9 = vrot.slane %v1099_v0, 2  ;;  %v1138_v11 = vrot.slane %v1100_v3, 1 }
  0x88   :  { %v1122_v1 = vsel %vm1121_vm2, %v1120_v62, %v1093_v60 }
  0x89   :  { %v1125_v5 = vsel %vm1124_vm3, %v1123_v63, %v1122_v1 }
  0x8a   :  { %v1128_v6 = vsel %vm1127_vm4, %v1126_v2, %v1125_v5 }
  0x8b   :  { %v1131_v8 = vsel %vm1130_vm5, %v1129_v4, %v1128_v6 }
  0x8c   :  { %v1134_v10 = vsel %vm1133_vm6, %v1132_v7, %v1131_v8 }
  0x8d   :  { %v1137_v12 = vsel %vm1136_vm7, %v1135_v9, %v1134_v10 }
  0x8e   :  { %v1140_v13 = vsel %vm1139_vm8, %v1138_v11, %v1137_v12 }
  0x8f   :  { %1597 = vmatmul.mubr.msk.f32.vlgmr.msra.gmra.mrb[32].mxu1 %vm110_vm0, %v1140_v13 }
  0x90   :  { %1603 = vmatprep.mubr.msk.f32.mxu1 %vm1657_vm1, %v1656_v16  ;;  %1600 = vmatpush3.bf16.msra.mxu1 %v1640_v35 }
  0x91   :  { %1601 = vmatprep.subr.bf16.mxu1 %v1656_v16 }
  0x94   :  { %1602 = vmatpush3.bf16.msra.mxu1 %v1641_v40 }
  0x95   :  { %1606 = vmatprep.subr.bf16.mxu1 %v1656_v16 }
  0xdd   :  { %v1498_v17 = vpop.f32.mrb[0].mxu0 }
  0xde   :  { %v234_v18 = vrot.slane %v1498_v17, 1  ;;  %v1918_v19 = vpop.f32.mrb[1].mxu0  ;;  %v1518_v20 = vpop.f32.mrb[0].mxu1 }
  0xdf   :  { %v232_v21 = vrot.slane %v1918_v19, 1  ;;  %v1499_v22 = vpop.f32.mrb[2].mxu0  ;;  %v313_v23 = vpop.f32.mrb[1].mxu1 }
  0xe0   :  { %v235_v24 = vrot.slane %v1499_v22, 1  ;;  %v172_v25 = vpop.f32.mrb[3].mxu0  ;;  %v1519_v26 = vpop.f32.mrb[2].mxu1 }
  0xe1   :  { %v233_v27 = vrot.slane %v172_v25, 1  ;;  %v316_v28 = vpop.f32.mrb[3].mxu1 }
  0xe2   :  { %v263_v29 = vsel %vm250_vm9, %v234_v18, %v235_v24 }
  0xe3   :  { %v1924_v30 = vadd.f32 %v1518_v20, %v263_v29  ;;  %v265_v31 = vsel %vm250_vm9, %v232_v21, %v233_v27  ;;  %v264_v32 = vsel %vm250_vm9, %v233_v27, %v234_v18 }
  0xe4   :  { %v1932_v33 = vadd.f32 %v313_v23, %v265_v31  ;;  %v1934_v34 = vadd.f32 %v316_v28, %v264_v32 }
  0xe5   :  { %v1502_v36 = vpop.f32.mrb[4].mxu0 }
  0xe6   :  { %v238_v37 = vrot.slane %v1502_v36, 1  ;;  %v185_v38 = vpop.f32.mrb[5].mxu0  ;;  %v1522_v39 = vpop.f32.mrb[4].mxu1 }
  0xe7   :  { %v236_v41 = vrot.slane %v185_v38, 1  ;;  %v1503_v42 = vpop.f32.mrb[6].mxu0  ;;  %v329_v43 = vpop.f32.mrb[5].mxu1 }
  0xe8   :  { %v239_v44 = vrot.slane %v1503_v42, 1  ;;  %v188_v45 = vpop.f32.mrb[7].mxu0  ;;  %v1523_v46 = vpop.f32.mrb[6].mxu1 }
  0xe9   :  { %v262_v47 = vsel %vm250_vm9, %v235_v24, %v236_v41  ;;  %v237_v48 = vrot.slane %v188_v45, 1  ;;  %v332_v49 = vpop.f32.mrb[7].mxu1 }
  0xea   :  { %v1945_v50 = vadd.f32 %v1519_v26, %v262_v47  ;;  %v259_v51 = vsel %vm250_vm9, %v238_v37, %v239_v44 }
  0xeb   :  { %v1949_v52 = vadd.f32 %v1522_v39, %v259_v51  ;;  %v261_v53 = vsel %vm250_vm9, %v236_v41, %v237_v48  ;;  %v260_v54 = vsel %vm250_vm9, %v237_v48, %v238_v37 }
  0xec   :  { %v1956_v55 = vadd.f32 %v329_v43, %v261_v53  ;;  %v1958_v56 = vadd.f32 %v332_v49, %v260_v54 }
  0xed   :  { %v1506_v57 = vpop.f32.mrb[8].mxu0 }
  0xee   :  { %v242_v58 = vrot.slane %v1506_v57, 1  ;;  %v201_v59 = vpop.f32.mrb[9].mxu0  ;;  %v1526_v60 = vpop.f32.mrb[8].mxu1 }
  0xef   :  { %v240_v61 = vrot.slane %v201_v59, 1  ;;  %v1507_v62 = vpop.f32.mrb[10].mxu0  ;;  %v345_v63 = vpop.f32.mrb[9].mxu1 }
  0xf0   :  { %v243_v0 = vrot.slane %v1507_v62, 1  ;;  %v204_v1 = vpop.f32.mrb[11].mxu0  ;;  %v1527_v2 = vpop.f32.mrb[10].mxu1 }
  0xf1   :  { %v258_v3 = vsel %vm250_vm9, %v239_v44, %v240_v61  ;;  %v241_v4 = vrot.slane %v204_v1, 1  ;;  %v348_v5 = vpop.f32.mrb[11].mxu1 }
  0xf2   :  { %v1962_v6 = vadd.f32 %v1523_v46, %v258_v3  ;;  %v255_v7 = vsel %vm250_vm9, %v242_v58, %v243_v0 }
  0xf3   :  { %v1966_v8 = vadd.f32 %v1526_v60, %v255_v7  ;;  %v257_v9 = vsel %vm250_vm9, %v240_v61, %v241_v4  ;;  %v256_v10 = vsel %vm250_vm9, %v241_v4, %v242_v58 }
  0xf4   :  { %v1972_v11 = vadd.f32 %v345_v63, %v257_v9  ;;  %v1974_v12 = vadd.f32 %v348_v5, %v256_v10 }
  0xf5   :  { %v1510_v13 = vpop.f32.mrb[12].mxu0 }
  0xf6   :  { %v246_v17 = vrot.slane %v1510_v13, 1  ;;  %v217_v18 = vpop.f32.mrb[13].mxu0  ;;  %v1530_v20 = vpop.f32.mrb[12].mxu1 }
  0xf7   :  { %v244_v22 = vrot.slane %v217_v18, 1  ;;  %v1511_v23 = vpop.f32.mrb[14].mxu0  ;;  %v361_v24 = vpop.f32.mrb[13].mxu1 }
  0xf8   :  { %v247_v25 = vrot.slane %v1511_v23, 1  ;;  %v220_v26 = vpop.f32.mrb[15].mxu0  ;;  %v1531_v27 = vpop.f32.mrb[14].mxu1 }
  0xf9   :  { %v254_v28 = vsel %vm250_vm9, %v243_v0, %v244_v22  ;;  %v245_v29 = vrot.slane %v220_v26, 1  ;;  %v364_v31 = vpop.f32.mrb[15].mxu1 }
  0xfa   :  { %v1978_v32 = vadd.f32 %v1527_v2, %v254_v28  ;;  %v251_v35 = vsel %vm250_vm9, %v246_v17, %v247_v25  ;;  %v266_v36 = vsel %vm250_vm9, %v247_v25, %v232_v21 }
  0xfb   :  { %v1986_v37 = vadd.f32 %v1530_v20, %v251_v35  ;;  %v253_v38 = vsel %vm250_vm9, %v244_v22, %v245_v29  ;;  %v1990_v39 = vadd.f32 %v1531_v27, %v266_v36  ;;  %v252_v40 = vsel %vm250_vm9, %v245_v29, %v246_v17 }
  0xfc   :  { %v1994_v41 = vadd.f32 %v361_v24, %v253_v38  ;;  %v1996_v42 = vadd.f32 %v364_v31, %v252_v40  ;;  %v883_v35 = vand.u32 127, %v248_v14 }
  0xfd   :  { %v1538_v43 = vpop.f32.mrb[16].mxu0 }
  0xfe   :  { %v492_v44 = vrot.slane %v1538_v43, 2  ;;  %v1998_v19 = vpop.f32.mrb[17].mxu0  ;;  %v1558_v45 = vpop.f32.mrb[16].mxu1  ;;  %vm884_vm12 = vcmp.lt.s32.totalorder %v883_v35, 32  ;;  %vm886_vm13 = vcmp.lt.s32.totalorder %v883_v35, 16 }
  0xff   :  { %v490_v21 = vrot.slane %v1998_v19, 2  ;;  %v1539_v46 = vpop.f32.mrb[18].mxu0  ;;  %v655_v47 = vrot.slane %v1558_v45, 3  ;;  %v2002_v48 = vpop.f32.mrb[17].mxu1 }
 0x100   :  { %v493_v49 = vrot.slane %v1539_v46, 2  ;;  %v430_v51 = vpop.f32.mrb[19].mxu0  ;;  %v653_v53 = vrot.slane %v2002_v48, 3  ;;  %v1559_v54 = vpop.f32.mrb[18].mxu1 }
 0x101   :  { %v491_v57 = vrot.slane %v430_v51, 2  ;;  %v656_v58 = vrot.slane %v1559_v54, 3  ;;  %v593_v59 = vpop.f32.mrb[19].mxu1 }
 0x102   :  { %v519_v60 = vsel %vm506_vm10, %v492_v44, %v493_v49  ;;  %v654_v61 = vrot.slane %v593_v59, 3 }
 0x103   :  { %v525_v62 = vadd.f32 %v519_v60, %v1924_v30  ;;  %v520_v63 = vsel %vm506_vm10, %v491_v57, %v492_v44  ;;  %v521_v0 = vsel %vm506_vm10, %v490_v21, %v491_v57  ;;  %v682_v1 = vsel %vm669_vm11, %v655_v47, %v656_v58 }
 0x104   :  { %v523_v2 = vadd.f32 %v521_v0, %v1932_v33  ;;  %v524_v3 = vadd.f32 %v520_v63, %v1934_v34  ;;  %v683_v4 = vsel %vm669_vm11, %v654_v61, %v655_v47  ;;  %v684_v30 = vsel %vm669_vm11, %v653_v53, %v654_v61 }
 0x105   :  { %v1542_v5 = vpop.f32.mrb[20].mxu0  ;;  %v2025_v7 = vadd.f32 %v682_v1, %v525_v62 }
 0x106   :  { %v496_v9 = vrot.slane %v1542_v5, 2  ;;  %v443_v10 = vpop.f32.mrb[21].mxu0  ;;  %v2027_v13 = vadd.f32 %v684_v30, %v523_v2  ;;  %v2029_v17 = vadd.f32 %v683_v4, %v524_v3  ;;  %v1562_v33 = vpop.f32.mrb[20].mxu1  ;;  %v1658_v30 = vmov 5  }
 0x107   :  { %v494_v18 = vrot.slane %v443_v10, 2  ;;  %v659_v34 = vrot.slane %v1562_v33, 3  ;;  %v606_v20 = vpop.f32.mrb[21].mxu1  ;;  %v1543_v22 = vpop.f32.mrb[22].mxu0  ;;  %v885_v5 = vsel %vm884_vm12, 4, %v1658_v30 }
 0x108   :  { %v657_v23 = vrot.slane %v606_v20, 3  ;;  %v497_v24 = vrot.slane %v1543_v22, 2  ;;  %v446_v25 = vpop.f32.mrb[23].mxu0  ;;  %v1563_v26 = vpop.f32.mrb[22].mxu1 }
 0x109   :  { %v518_v27 = vsel %vm506_vm10, %v493_v49, %v494_v18  ;;  %v495_v28 = vrot.slane %v446_v25, 2  ;;  %v660_v29 = vrot.slane %v1563_v26, 3  ;;  %v609_v31 = vpop.f32.mrb[23].mxu1 }
 0x10a   :  { %v526_v36 = vadd.f32 %v518_v27, %v1945_v50  ;;  %v681_v38 = vsel %vm669_vm11, %v656_v58, %v657_v23  ;;  %v515_v40 = vsel %vm506_vm10, %v496_v9, %v497_v24  ;;  %v658_v43 = vrot.slane %v609_v31, 3 }
 0x10b   :  { %v529_v44 = vadd.f32 %v515_v40, %v1949_v52  ;;  %v516_v45 = vsel %vm506_vm10, %v495_v28, %v496_v9  ;;  %v517_v46 = vsel %vm506_vm10, %v494_v18, %v495_v28  ;;  %v678_v14 = vsel %vm669_vm11, %v659_v34, %v660_v29 }
 0x10c   :  { %v2046_v47 = vadd.f32 %v681_v38, %v526_v36  ;;  %v527_v50 = vadd.f32 %v517_v46, %v1956_v55  ;;  %v528_v49 = vadd.f32 %v516_v45, %v1958_v56  ;;  %v679_v51 = vsel %vm669_vm11, %v658_v43, %v659_v34 }
 0x10d   :  { %v1546_v54 = vpop.f32.mrb[24].mxu0  ;;  %v2052_v52 = vadd.f32 %v678_v14, %v529_v44  ;;  %v680_v57 = vsel %vm669_vm11, %v657_v23, %v658_v43  ;;  %v887_v40 = vsel %vm886_vm13, 3, %v885_v5 }
 0x10e   :  { %v500_v58 = vrot.slane %v1546_v54, 2  ;;  %v459_v59 = vpop.f32.mrb[25].mxu0  ;;  %v2056_v60 = vadd.f32 %v680_v57, %v527_v50  ;;  %v2058_v61 = vadd.f32 %v679_v51, %v528_v49  ;;  %v1566_v62 = vpop.f32.mrb[24].mxu1 }
 0x10f   :  { %v498_v55 = vrot.slane %v459_v59, 2  ;;  %v663_v63 = vrot.slane %v1566_v62, 3  ;;  %v622_v56 = vpop.f32.mrb[25].mxu1  ;;  %v1547_v0 = vpop.f32.mrb[26].mxu0 }
 0x110   :  { %v661_v1 = vrot.slane %v622_v56, 3  ;;  %v501_v2 = vrot.slane %v1547_v0, 2  ;;  %v462_v3 = vpop.f32.mrb[27].mxu0  ;;  %v1567_v4 = vpop.f32.mrb[26].mxu1 }
 0x111   :  { %v514_v9 = vsel %vm506_vm10, %v497_v24, %v498_v55  ;;  %v499_v10 = vrot.slane %v462_v3, 2  ;;  %v664_v33 = vrot.slane %v1567_v4, 3  ;;  %v625_v18 = vpop.f32.mrb[27].mxu1 }
 0x112   :  { %v530_v34 = vadd.f32 %v514_v9, %v1962_v6  ;;  %v677_v20 = vsel %vm669_vm11, %v660_v29, %v661_v1  ;;  %v511_v22 = vsel %vm506_vm10, %v500_v58, %v501_v2  ;;  %v662_v23 = vrot.slane %v625_v18, 3 }
 0x113   :  { %v533_v25 = vadd.f32 %v511_v22, %v1966_v8  ;;  %v512_v26 = vsel %vm506_vm10, %v499_v10, %v500_v58  ;;  %v513_v24 = vsel %vm506_vm10, %v498_v55, %v499_v10  ;;  %v674_v27 = vsel %vm669_vm11, %v663_v63, %v664_v33 }
 0x114   :  { %v2074_v28 = vadd.f32 %v677_v20, %v530_v34  ;;  %v531_v6 = vadd.f32 %v513_v24, %v1972_v11  ;;  %v532_v29 = vadd.f32 %v512_v26, %v1974_v12  ;;  %v675_v31 = vsel %vm669_vm11, %v662_v23, %v663_v63 }
 0x115   :  { %v1550_v36 = vpop.f32.mrb[28].mxu0  ;;  %v2080_v8 = vadd.f32 %v674_v27, %v533_v25  ;;  %v676_v38 = vsel %vm669_vm11, %v661_v1, %v662_v23  ;;  %v888_v12 = vstv %s2264_s0  ;;  %v881_v23 = vadd.s32 8, %v1916_v15 }
 0x116   :  { %v504_v43 = vrot.slane %v1550_v36, 2  ;;  %v475_v44 = vpop.f32.mrb[29].mxu0  ;;  %v2085_v45 = vadd.f32 %v676_v38, %v531_v6  ;;  %v2087_v46 = vadd.f32 %v675_v31, %v532_v29  ;;  %v1570_v11 = vpop.f32.mrb[28].mxu1  ;;  %v889_v56 = vsub.s32 %v888_v12, %v887_v40 }
 0x117   :  { %v502_v14 = vrot.slane %v475_v44, 2  ;;  %v1551_v50 = vpop.f32.mrb[30].mxu0  ;;  %v667_v49 = vrot.slane %v1570_v11, 3  ;;  %v638_v51 = vpop.f32.mrb[29].mxu1 }
 0x118   :  { %v505_v54 = vrot.slane %v1551_v50, 2  ;;  %v665_v57 = vrot.slane %v638_v51, 3  ;;  %v1571_v58 = vpop.f32.mrb[30].mxu1  ;;  %v478_v35 = vpop.f32.mrb[31].mxu0  ;;  %vm890_vm15 = vcmp.le.s32.totalorder %v1916_v15, %v889_v56  ;;  %vm891_vm9 = vcmp.le.s32.totalorder %v881_v23, %v889_v56 }
 0x119   :  { %v510_v59 = vsel %vm506_vm10, %v501_v2, %v502_v14  ;;  %v668_v62 = vrot.slane %v1571_v58, 3  ;;  %v503_v55 = vrot.slane %v478_v35, 2  ;;  %v641_v63 = vpop.f32.mrb[31].mxu1  ;;  %v2149_v11 = vsel %vm890_vm15, 1.0, %v1656_v16 }
 0x11a   :  { %v534_v0 = vadd.f32 %v510_v59, %v1978_v32  ;;  %v507_v1 = vsel %vm506_vm10, %v504_v43, %v505_v54  ;;  %v522_v3 = vsel %vm506_vm10, %v505_v54, %v490_v21  ;;  %v673_v4 = vsel %vm669_vm11, %v664_v33, %v665_v57 }
 0x11b   :  { %v537_v30 = vadd.f32 %v507_v1, %v1986_v37  ;;  %v538_v2 = vadd.f32 %v522_v3, %v1990_v39  ;;  %v670_v5 = vsel %vm669_vm11, %v667_v49, %v668_v62  ;;  %v685_v32 = vsel %vm669_vm11, %v668_v62, %v653_v53 }
 0x11c   :  { %v2111_v9 = vadd.f32 %v673_v4, %v534_v0  ;;  %v508_v19 = vsel %vm506_vm10, %v503_v55, %v504_v43  ;;  %v509_v21 = vsel %vm506_vm10, %v502_v14, %v503_v55  ;;  %v666_v10 = vrot.slane %v641_v63, 3 }
 0x11d   :  { %v2117_v37 = vadd.f32 %v670_v5, %v537_v30  ;;  %v2119_v39 = vadd.f32 %v685_v32, %v538_v2  ;;  %v535_v33 = vadd.f32 %v509_v21, %v1994_v41  ;;  %v536_v48 = vadd.f32 %v508_v19, %v1996_v42  ;;  %v1578_v18 = vpop.f32.mrb[32].mxu0 }
 0x11e   :  { %v818_v34 = vrot.slane %v1578_v18, 4  ;;  %v2123_v53 = vpop.f32.mrb[33].mxu0  ;;  %v671_v20 = vsel %vm669_vm11, %v666_v10, %v667_v49  ;;  %v672_v22 = vsel %vm669_vm11, %v665_v57, %v666_v10  ;;  %v2152_v12 = vsel %vm891_vm9, 1.0, %v1656_v16 }
 0x11f   :  { %v816_v25 = vrot.slane %v2123_v53, 4  ;;  %v2131_v26 = vadd.f32 %v672_v22, %v535_v33  ;;  %v2133_v24 = vadd.f32 %v671_v20, %v536_v48  ;;  %v1579_v41 = vpop.f32.mrb[34].mxu0  ;;  %vm912_vm10 = vcmask 392192  }
 0x120   :  { %v819_v42 = vrot.slane %v1579_v41, 4  ;;  %v756_v27 = vpop.f32.mrb[35].mxu0 }
 0x121   :  { %v817_v6 = vrot.slane %v756_v27, 4 }
 0x122   :  { %v845_v29 = vsel %vm832_vm14, %v818_v34, %v819_v42 }
 0x123   :  { %v851_v31 = vadd.f32 %v845_v29, %v2025_v7  ;;  %v846_v36 = vsel %vm832_vm14, %v817_v6, %v818_v34  ;;  %v847_v38 = vsel %vm832_vm14, %v816_v25, %v817_v6 }
 0x124   :  { %v849_v40 = vadd.f32 %v847_v38, %v2027_v13  ;;  %v850_v43 = vadd.f32 %v846_v36, %v2029_v17 }
 0x125   :  { %v867_v44 = vmax.f32 %v851_v31, 0.0  ;;  %v1582_v7 = vpop.f32.mrb[36].mxu0 }
 0x126   :  { %v865_v14 = vmax.f32 %v849_v40, 0.0  ;;  %v866_v50 = vmax.f32 %v850_v43, 0.0  ;;  %v822_v49 = vrot.slane %v1582_v7, 4  ;;  %v769_v51 = vpop.f32.mrb[37].mxu0 }
 0x127   :  { %v820_v54 = vrot.slane %v769_v51, 4  ;;  %v1583_v57 = vpop.f32.mrb[38].mxu0  ;;  %v898_v59 = vmul.f32 %v2149_v11, %v867_v44 }
 0x128   :  { %v896_v58 = vmul.f32 %v2149_v11, %v865_v14  ;;  %v897_v13 = vmul.f32 %v2152_v12, %v866_v50  ;;  %v823_v17 = vrot.slane %v1583_v57, 4  ;;  %v772_v35 = vpop.f32.mrb[39].mxu0 }
 0x129   :  { %v844_v62 = vsel %vm832_vm14, %v819_v42, %v820_v54  ;;  %v821_v55 = vrot.slane %v772_v35, 4  ;;  %v922_v20 = vsel %vm912_vm10, %v898_v59, -inf }
 0x12a   :  { %v913_v63 = vsel %vm912_vm10, %v896_v58, -inf  ;;  %v914_v56 = vsel %vm912_vm10, %v897_v13, -inf  ;;  %v852_v0 = vadd.f32 %v844_v62, %v2046_v47  ;;  %v841_v1 = vsel %vm832_vm14, %v822_v49, %v823_v17 }
 0x12b   :  { %v915_v3 = vmax.f32 %v913_v63, %v914_v56  ;;  %v855_v4 = vadd.f32 %v841_v1, %v2052_v52  ;;  %v842_v30 = vsel %vm832_vm14, %v821_v55, %v822_v49  ;;  %v843_v2 = vsel %vm832_vm14, %v820_v54, %v821_v55 }
 0x12c   :  { %v868_v5 = vmax.f32 %v852_v0, 0.0  ;;  %v853_v32 = vadd.f32 %v843_v2, %v2056_v60  ;;  %v854_v19 = vadd.f32 %v842_v30, %v2058_v61 }
 0x12d   :  { %v916_v21 = vrot.slane %v915_v3, 4  ;;  %v871_v10 = vmax.f32 %v855_v4, 0.0  ;;  %v1586_v47 = vpop.f32.mrb[40].mxu0 }
 0x12e   :  { %v899_v33 = vmul.f32 %v2152_v12, %v868_v5  ;;  %v869_v48 = vmax.f32 %v853_v32, 0.0  ;;  %v870_v18 = vmax.f32 %v854_v19, 0.0  ;;  %v826_v34 = vrot.slane %v1586_v47, 4  ;;  %v785_v52 = vpop.f32.mrb[41].mxu0 }
 0x12f   :  { %v917_v22 = vmax.f32 %v915_v3, %v916_v21  ;;  %v902_v23 = vmul.f32 %v2149_v11, %v871_v10  ;;  %v824_v41 = vrot.slane %v785_v52, 4  ;;  %v1587_v42 = vpop.f32.mrb[42].mxu0 }
 0x130   :  { %v923_v60 = vsel %vm912_vm10, %v899_v33, -inf  ;;  %v900_v61 = vmul.f32 %v2149_v11, %v869_v48  ;;  %v901_v27 = vmul.f32 %v2152_v12, %v870_v18  ;;  %v827_v6 = vrot.slane %v1587_v42, 4  ;;  %v788_v29 = vpop.f32.mrb[43].mxu0 }
 0x131   :  { %v918_v31 = vrot.slane %v917_v22, 2  ;;  %v924_v36 = vmax.f32 %v922_v20, %v923_v60  ;;  %v840_v38 = vsel %vm832_vm14, %v823_v17, %v824_v41  ;;  %v940_v54 = vsel %vm912_vm10, %v902_v23, -inf }
 0x132   :  { %v931_v40 = vsel %vm912_vm10, %v900_v61, -inf  ;;  %v932_v43 = vsel %vm912_vm10, %v901_v27, -inf  ;;  %v856_v44 = vadd.f32 %v840_v38, %v2074_v28  ;;  %v837_v7 = vsel %vm832_vm14, %v826_v34, %v827_v6 }
 0x133   :  { %v919_v14 = vmax.f32 %v917_v22, %v918_v31  ;;  %v925_v50 = vrot.slane %v924_v36, 4  ;;  %v933_v49 = vmax.f32 %v931_v40, %v932_v43  ;;  %v859_v51 = vadd.f32 %v837_v7, %v2080_v8 }
 0x134   :  { %v872_v57 = vmax.f32 %v856_v44, 0.0  ;;  %v825_v58 = vrot.slane %v788_v29, 4 }
 0x135   :  { %v920_v13 = vrot.slane %v919_v14, 1  ;;  %v926_v17 = vmax.f32 %v924_v36, %v925_v50  ;;  %v934_v35 = vrot.slane %v933_v49, 4  ;;  %v875_v59 = vmax.f32 %v859_v51, 0.0  ;;  %v1590_v62 = vpop.f32.mrb[44].mxu0 }
 0x136   :  { %v903_v55 = vmul.f32 %v2152_v12, %v872_v57  ;;  %v838_v28 = vsel %vm832_vm14, %v825_v58, %v826_v34  ;;  %v839_v63 = vsel %vm832_vm14, %v824_v41, %v825_v58  ;;  %v830_v56 = vrot.slane %v1590_v62, 4  ;;  %v801_v0 = vpop.f32.mrb[45].mxu0 }
 0x137   :  { %v921_v8 = vmax.f32 %v919_v14, %v920_v13  ;;  %v927_v1 = vrot.slane %v926_v17, 2  ;;  %v935_v3 = vmax.f32 %v933_v49, %v934_v35  ;;  %v906_v4 = vmul.f32 %v2149_v11, %v875_v59  ;;  %v1591_v30 = vpop.f32.mrb[46].mxu0 }
 0x138   :  { %v941_v2 = vsel %vm912_vm10, %v903_v55, -inf  ;;  %v857_v5 = vadd.f32 %v839_v63, %v2085_v45  ;;  %v858_v32 = vadd.f32 %v838_v28, %v2087_v46  ;;  %v828_v19 = vrot.slane %v801_v0, 4  ;;  %v804_v21 = vpop.f32.mrb[47].mxu0 }
 0x139   :  { %v928_v10 = vmax.f32 %v926_v17, %v927_v1  ;;  %v936_v47 = vrot.slane %v935_v3, 2  ;;  %v942_v33 = vmax.f32 %v940_v54, %v941_v2  ;;  %v958_v48 = vsel %vm912_vm10, %v906_v4, -inf }
 0x13a   :  { %v873_v18 = vmax.f32 %v857_v5, 0.0  ;;  %v874_v34 = vmax.f32 %v858_v32, 0.0  ;;  %v836_v52 = vsel %vm832_vm14, %v827_v6, %v828_v19  ;;  %v831_v20 = vrot.slane %v1591_v30, 4 }
 0x13b   :  { %v929_v22 = vrot.slane %v928_v10, 1  ;;  %v937_v23 = vmax.f32 %v935_v3, %v936_v47  ;;  %v943_v41 = vrot.slane %v942_v33, 4  ;;  %v860_v45 = vadd.f32 %v836_v52, %v2111_v9 }
 0x13c   :  { %v904_v46 = vmul.f32 %v2149_v11, %v873_v18  ;;  %v905_v42 = vmul.f32 %v2152_v12, %v874_v34  ;;  %v833_v60 = vsel %vm832_vm14, %v830_v56, %v831_v20  ;;  %v848_v61 = vsel %vm832_vm14, %v831_v20, %v816_v25 }
 0x13d   :  { %v930_v27 = vmax.f32 %v928_v10, %v929_v22  ;;  %v938_v6 = vrot.slane %v937_v23, 1  ;;  %v944_v29 = vmax.f32 %v942_v33, %v943_v41  ;;  %v876_v31 = vmax.f32 %v860_v45, 0.0 }
 0x13e   :  { %v949_v36 = vsel %vm912_vm10, %v904_v46, -inf  ;;  %v950_v9 = vsel %vm912_vm10, %v905_v42, -inf  ;;  %v863_v38 = vadd.f32 %v833_v60, %v2117_v37  ;;  %v864_v40 = vadd.f32 %v848_v61, %v2119_v39 }
 0x13f   :  { %v939_v43 = vmax.f32 %v937_v23, %v938_v6  ;;  %v945_v44 = vrot.slane %v944_v29, 2  ;;  %v951_v7 = vmax.f32 %v949_v36, %v950_v9  ;;  %v907_v53 = vmul.f32 %v2152_v12, %v876_v31  ;;  %v1420_v36 = vld [vmem:[%s2265_s5] ss:$0 sm:$0xff] }
 0x140   :  { %v879_v14 = vmax.f32 %v863_v38, 0.0  ;;  %v880_v50 = vmax.f32 %v864_v40, 0.0  ;;  %v829_v25 = vrot.slane %v804_v21, 4  ;;  %v1265_v49 = vsel %vm1121_vm2, %v930_v27, %v921_v8 }
 0x141   :  { %v946_v51 = vmax.f32 %v944_v29, %v945_v44  ;;  %v952_v54 = vrot.slane %v951_v7, 4  ;;  %v959_v57 = vsel %vm912_vm10, %v907_v53, -inf  ;;  %v1266_v58 = vsel %vm1124_vm3, %v939_v43, %v1265_v49  ;;  %v1642_v43 = vld [vmem:[%s2263_s6] sm:$0xff]   ;;  %v1644_v53 = vld [vmem:[%s2263_s6 + $0x10] sm:$0xff]  }
 0x142   :  { %v960_v13 = vmax.f32 %v958_v48, %v959_v57  ;;  %v910_v37 = vmul.f32 %v2149_v11, %v879_v14  ;;  %v911_v39 = vmul.f32 %v2152_v12, %v880_v50  ;;  %v834_v17 = vsel %vm832_vm14, %v829_v25, %v830_v56  ;;  %v1431_v49 = vld [vmem:[%s2266_s8] ss:$0 sm:$0xff] }
 0x143   :  { %v947_v35 = vrot.slane %v946_v51, 1  ;;  %v953_v59 = vmax.f32 %v951_v7, %v952_v54  ;;  %v835_v62 = vsel %vm832_vm14, %v828_v19, %v829_v25  ;;  %v862_v55 = vadd.f32 %v834_v17, %v2133_v24  ;;  %v1643_v7 = vld [vmem:[%s2263_s6 + $0x8] sm:$0xff]  }
 0x144   :  { %v961_v28 = vrot.slane %v960_v13, 4  ;;  %v976_v63 = vsel %vm912_vm10, %v910_v37, -inf  ;;  %v977_v0 = vsel %vm912_vm10, %v911_v39, -inf  ;;  %v861_v8 = vadd.f32 %v835_v62, %v2131_v26 }
 0x145   :  { %v948_v1 = vmax.f32 %v946_v51, %v947_v35  ;;  %v954_v3 = vrot.slane %v953_v59, 2  ;;  %v978_v4 = vmax.f32 %v976_v63, %v977_v0  ;;  %v878_v30 = vmax.f32 %v862_v55, 0.0 }
 0x146   :  { %v962_v2 = vmax.f32 %v960_v13, %v961_v28  ;;  %v877_v56 = vmax.f32 %v861_v8, 0.0 }
 0x147   :  { %v955_v5 = vmax.f32 %v953_v59, %v954_v3  ;;  %v979_v32 = vrot.slane %v978_v4, 4  ;;  %v909_v15 = vmul.f32 %v2152_v12, %v878_v30  ;;  %v1267_v19 = vsel %vm1127_vm4, %v948_v1, %v1266_v58 }
 0x148   :  { %v963_v24 = vrot.slane %v962_v2, 2  ;;  %v908_v21 = vmul.f32 %v2149_v11, %v877_v56 }
 0x149   :  { %v956_v10 = vrot.slane %v955_v5, 1  ;;  %v980_v47 = vmax.f32 %v978_v4, %v979_v32  ;;  %v968_v33 = vsel %vm912_vm10, %v909_v15, -inf }
 0x14a   :  { %v964_v26 = vmax.f32 %v962_v2, %v963_v24  ;;  %v967_v48 = vsel %vm912_vm10, %v908_v21, -inf }
 0x14b   :  { %v969_v18 = vmax.f32 %v967_v48, %v968_v33  ;;  %v957_v34 = vmax.f32 %v955_v5, %v956_v10  ;;  %v981_v20 = vrot.slane %v980_v47, 2 }
 0x14c   :  { %v965_v52 = vrot.slane %v964_v26, 1 }
 0x14d   :  { %v970_v22 = vrot.slane %v969_v18, 4  ;;  %v1268_v23 = vsel %vm1130_vm5, %v957_v34, %v1267_v19  ;;  %v982_v45 = vmax.f32 %v980_v47, %v981_v20 }
 0x14e   :  { %v966_v12 = vmax.f32 %v964_v26, %v965_v52 }
 0x14f   :  { %v971_v41 = vmax.f32 %v969_v18, %v970_v22  ;;  %v983_v60 = vrot.slane %v982_v45, 1 }
 0x150   :  { %v1269_v46 = vsel %vm1133_vm6, %v966_v12, %v1268_v23 }
 0x151   :  { %v972_v11 = vrot.slane %v971_v41, 2  ;;  %v984_v6 = vmax.f32 %v982_v45, %v983_v60 }
 0x153   :  { %v973_v42 = vmax.f32 %v971_v41, %v972_v11 }
 0x155   :  { %v974_v61 = vrot.slane %v973_v42, 1 }
 0x157   :  { %v975_v27 = vmax.f32 %v973_v42, %v974_v61 }
 0x159   :  { %v1270_v29 = vsel %vm1136_vm7, %v975_v27, %v1269_v46 }
 0x15a   :  { %v1271_v31 = vsel %vm1139_vm8, %v984_v6, %v1270_v29 }
 0x162   :  { %v1189_v9 = vpop.f32.mrb[32].mxu1 }
 0x163   :  { %v1190_v38 = vadd.f32 %v1420_v36, %v1189_v9  ;;  %v1598_v40 = vpop.f32.mrb[33].mxu1 }
 0x165   :  { %1653 = vtanh.f32 %v1190_v38 }
 0x16f   :  { %v1654_v44 = vpop.eup %1653 }
 0x170   :  { %1604 = vmatmul.mubr.msk.f32.vlgmr.msra.gmra.mrb[34].mxu1 %vm110_vm0, %v1654_v44  ;;  %vm1338_vm0 = vcmask 80896  }
 0x171   :  { %1607 = vmatpush3.bf16.msra.mxu1 %v1642_v43  ;;  %1612 = vmatprep.mubr.msk.f32.mxu1 %vm1657_vm1, %v1656_v16 }
 0x172   :  { %1608 = vmatprep.subr.bf16.mxu1 %v1656_v16 }
 0x175   :  { %1609 = vmatpush3.bf16.msra.mxu1 %v1643_v7 }
 0x176   :  { %1610 = vmatprep.subr.bf16.mxu1 %v1656_v16 }
 0x179   :  { %1611 = vmatpush3.bf16.msra.mxu1 %v1644_v53 }
 0x17c   :  { %1613 = vmatmul.mubr.msk.f32.vlgmr.msra.gmra.mrb[36].mxu1 %vm912_vm10, %v1271_v31 }
 0x243   :  { %v1253_v14 = vpop.f32.mrb[34].mxu1 }
 0x244   :  { %v1605_v50 = vpop.f32.mrb[35].mxu1 }
 0x24f   :  { %v1326_v25 = vpop.f32.mrb[36].mxu1 }
 0x250   :  { %v1327_v51 = vadd.f32 %v1326_v25, %v1253_v14  ;;  %v1614_v54 = vpop.f32.mrb[37].mxu1 }
 0x252   :  { %v1337_v57 = vadd.f32 %v1431_v49, %v1327_v51 }
 0x254   :  { %1339 = vst.msk [vmem:[%s2267_s9] sm:$0xff] %vm1338_vm0, %v1337_v57 }

</bundles_post_ra>
